<compile_context>
chip_gen: v5e
topology: v5e:2x2
jax: 0.10.0
libtpu: 0.0.40
codegen_flags: <defaults>
</compile_context>

<pallas_src>
import jax
import jax.numpy as jnp
from jax.experimental import pallas as pl
from jax.experimental.pallas import tpu as pltpu

# Packed-parameter row layout (columns zero-padded to width 16):
#   rows  0:2   w1 (2, 8)
#   row   2     b1 (1, 8)
#   rows  3:11  w2 (8, 16)
#   row   11    b2 (1, 16)
#   rows 12:28  w3 (16, 1)
#   row   28    b3 (1, 1)
_PACK_COLS = 16
_PACK_ROWS = 29


def pack_params(w1, b1, w2, b2, w3, b3):
    def pad(a):
        return jnp.pad(a, ((0, 0), (0, _PACK_COLS - a.shape[1])))
    return jnp.concatenate(
        [pad(w1), pad(b1), pad(w2), pad(b2), pad(w3), pad(b3)], axis=0
    ).astype(jnp.float32)


def _dense_vpu(x, w, b):
    # y = x @ w + b as a bias-initialised sum of outer products, fully unrolled
    # over the (tiny, static) contraction dim -> pure VPU, no MXU round-trip.
    acc = jnp.broadcast_to(b, (x.shape[0], w.shape[1]))
    for k in range(w.shape[0]):
        acc = acc + x[:, k:k + 1] * w[k:k + 1, :]
    return acc


def mlp_kernel(x_ref, p_ref, o_ref):
    x = x_ref[...]            # (Bb, 2)   f32
    p = p_ref[...]            # (29, 16)  f32 packed params

    w1, b1 = p[0:2, 0:8],   p[2:3, 0:8]
    w2, b2 = p[3:11, 0:16], p[11:12, 0:16]
    w3, b3 = p[12:28, 0:1], p[28:29, 0:1]

    h1 = jnp.maximum(_dense_vpu(x, w1, b1), 0.0)    # fc1 + ReLU
    h2 = jnp.maximum(_dense_vpu(h1, w2, b2), 0.0)   # fc2 + ReLU
    h3 = _dense_vpu(h2, w3, b3)                     # fc3
    o_ref[...] = jax.nn.sigmoid(h3)                 # stable sigmoid (EUP exp)


def mlp_forward(x, params):
    B, d_in = x.shape
    # Single grid step at small B; for large B, blocks stay sublane-aligned
    # (multiple of 8) and the batch axis is "parallel" (megacore-shardable).
    block_b = B if B <= 512 else 512
    assert B % block_b == 0 and (block_b == B or block_b % 8 == 0)
    grid = (B // block_b,)
    vmem = pltpu.MemorySpace.VMEM
    return pl.pallas_call(
        mlp_kernel,
        out_shape=jax.ShapeDtypeStruct((B, 1), jnp.float32),
        grid=grid,
        in_specs=[
            pl.BlockSpec((block_b, d_in), lambda i: (i, 0), memory_space=vmem),
            pl.BlockSpec(params.shape, lambda i: (0, 0), memory_space=vmem),
        ],
        out_specs=pl.BlockSpec((block_b, 1), lambda i: (i, 0), memory_space=vmem),
        compiler_params=pltpu.CompilerParams(
            dimension_semantics=("parallel",)),
    )(x, params)


def init_linear(key, fan_in, fan_out):
    # PyTorch nn.Linear default init: U(-1/sqrt(fan_in), 1/sqrt(fan_in))
    kw, kb = jax.random.split(key)
    bound = 1.0 / jnp.sqrt(fan_in)
    w = jax.random.uniform(kw, (fan_in, fan_out), jnp.float32, -bound, bound)
    b = jax.random.uniform(kb, (1, fan_out), jnp.float32, -bound, bound)
    return w, b


if __name__ == "__main__":
    key = jax.random.PRNGKey(0)
    kx, k1, k2, k3 = jax.random.split(key, 4)

    B = 8
    x = jax.random.normal(kx, (B, 2), jnp.float32)

    w1, b1 = init_linear(k1, 2, 8)
    w2, b2 = init_linear(k2, 8, 16)
    w3, b3 = init_linear(k3, 16, 1)

    params = pack_params(w1, b1, w2, b2, w3, b3)
    assert params.shape == (_PACK_ROWS, _PACK_COLS)

    out = mlp_forward(x, params)
    jax.block_until_ready(out)

    # Pure-JAX reference with identical semantics.
    ref = jnp.maximum(x @ w1 + b1, 0.0)
    ref = jnp.maximum(ref @ w2 + b2, 0.0)
    ref = jax.nn.sigmoid(ref @ w3 + b3)

    assert out.shape == (B, 1)
    assert jnp.allclose(out, ref, atol=1e-5, rtol=1e-5)

    print("KERNEL_OK")
</pallas_src>

<mosaic_0001>
module attributes {stable_mosaic.version = 11 : i64} {
  func.func @mlp_kernel(%arg0: i32, %arg1: memref<8x2xf32, #tpu.memory_space<vmem>>, %arg2: memref<29x16xf32, #tpu.memory_space<vmem>>, %arg3: memref<8x1xf32, #tpu.memory_space<vmem>>) attributes {dimension_semantics = [#tpu.dimension_semantics<parallel>], iteration_bounds = array<i64: 1>, scalar_prefetch = 0 : i64, scratch_operands = 0 : i64, tpu.core_type = #tpu.core_type<tc>, window_params = [{transform_indices = @transform_0, window_bounds = array<i64: 8, 2>}, {pipeline_mode = #tpu.pipeline_mode<synchronous>, transform_indices = @transform_1, window_bounds = array<i64: 29, 16>}, {transform_indices = @transform_2, window_bounds = array<i64: 8, 1>}]} {
    %c0 = arith.constant 0 : index
    %c0_0 = arith.constant 0 : index
    %0 = vector.load %arg1[%c0, %c0_0] : memref<8x2xf32, #tpu.memory_space<vmem>>, vector<8x2xf32>
    %c0_1 = arith.constant 0 : index
    %c0_2 = arith.constant 0 : index
    %1 = vector.load %arg2[%c0_1, %c0_2] : memref<29x16xf32, #tpu.memory_space<vmem>>, vector<29x16xf32>
    %2 = vector.extract_strided_slice %1 {offsets = [0, 0], sizes = [2, 8], strides = [1, 1]} : vector<29x16xf32> to vector<2x8xf32>
    %3 = vector.extract_strided_slice %1 {offsets = [2, 0], sizes = [1, 8], strides = [1, 1]} : vector<29x16xf32> to vector<1x8xf32>
    %4 = vector.extract_strided_slice %1 {offsets = [3, 0], sizes = [8, 16], strides = [1, 1]} : vector<29x16xf32> to vector<8x16xf32>
    %5 = vector.extract_strided_slice %1 {offsets = [11, 0], sizes = [1, 16], strides = [1, 1]} : vector<29x16xf32> to vector<1x16xf32>
    %6 = vector.extract_strided_slice %1 {offsets = [12, 0], sizes = [16, 1], strides = [1, 1]} : vector<29x16xf32> to vector<16x1xf32>
    %7 = vector.extract_strided_slice %1 {offsets = [28, 0], sizes = [1, 1], strides = [1, 1]} : vector<29x16xf32> to vector<1x1xf32>
    %8 = vector.shape_cast %3 : vector<1x8xf32> to vector<1x8xf32>
    %9 = vector.broadcast %8 : vector<1x8xf32> to vector<8x8xf32>
    %10 = vector.extract_strided_slice %0 {offsets = [0, 0], sizes = [8, 1], strides = [1, 1]} : vector<8x2xf32> to vector<8x1xf32>
    %11 = vector.extract_strided_slice %2 {offsets = [0, 0], sizes = [1, 8], strides = [1, 1]} : vector<2x8xf32> to vector<1x8xf32>
    %12 = vector.broadcast %10 : vector<8x1xf32> to vector<8x8xf32>
    %13 = vector.broadcast %11 : vector<1x8xf32> to vector<8x8xf32>
    %14 = arith.mulf %12, %13 : vector<8x8xf32>
    %15 = arith.addf %9, %14 : vector<8x8xf32>
    %16 = vector.extract_strided_slice %0 {offsets = [0, 1], sizes = [8, 1], strides = [1, 1]} : vector<8x2xf32> to vector<8x1xf32>
    %17 = vector.extract_strided_slice %2 {offsets = [1, 0], sizes = [1, 8], strides = [1, 1]} : vector<2x8xf32> to vector<1x8xf32>
    %18 = vector.broadcast %16 : vector<8x1xf32> to vector<8x8xf32>
    %19 = vector.broadcast %17 : vector<1x8xf32> to vector<8x8xf32>
    %20 = arith.mulf %18, %19 : vector<8x8xf32>
    %21 = arith.addf %15, %20 : vector<8x8xf32>
    %cst = arith.constant 0.000000e+00 : f32
    %22 = vector.broadcast %cst : f32 to vector<8x8xf32>
    %23 = arith.maximumf %21, %22 : vector<8x8xf32>
    %24 = vector.shape_cast %5 : vector<1x16xf32> to vector<1x16xf32>
    %25 = vector.broadcast %24 : vector<1x16xf32> to vector<8x16xf32>
    %26 = vector.extract_strided_slice %23 {offsets = [0, 0], sizes = [8, 1], strides = [1, 1]} : vector<8x8xf32> to vector<8x1xf32>
    %27 = vector.extract_strided_slice %4 {offsets = [0, 0], sizes = [1, 16], strides = [1, 1]} : vector<8x16xf32> to vector<1x16xf32>
    %28 = vector.broadcast %26 : vector<8x1xf32> to vector<8x16xf32>
    %29 = vector.broadcast %27 : vector<1x16xf32> to vector<8x16xf32>
    %30 = arith.mulf %28, %29 : vector<8x16xf32>
    %31 = arith.addf %25, %30 : vector<8x16xf32>
    %32 = vector.extract_strided_slice %23 {offsets = [0, 1], sizes = [8, 1], strides = [1, 1]} : vector<8x8xf32> to vector<8x1xf32>
    %33 = vector.extract_strided_slice %4 {offsets = [1, 0], sizes = [1, 16], strides = [1, 1]} : vector<8x16xf32> to vector<1x16xf32>
    %34 = vector.broadcast %32 : vector<8x1xf32> to vector<8x16xf32>
    %35 = vector.broadcast %33 : vector<1x16xf32> to vector<8x16xf32>
    %36 = arith.mulf %34, %35 : vector<8x16xf32>
    %37 = arith.addf %31, %36 : vector<8x16xf32>
    %38 = vector.extract_strided_slice %23 {offsets = [0, 2], sizes = [8, 1], strides = [1, 1]} : vector<8x8xf32> to vector<8x1xf32>
    %39 = vector.extract_strided_slice %4 {offsets = [2, 0], sizes = [1, 16], strides = [1, 1]} : vector<8x16xf32> to vector<1x16xf32>
    %40 = vector.broadcast %38 : vector<8x1xf32> to vector<8x16xf32>
    %41 = vector.broadcast %39 : vector<1x16xf32> to vector<8x16xf32>
    %42 = arith.mulf %40, %41 : vector<8x16xf32>
    %43 = arith.addf %37, %42 : vector<8x16xf32>
    %44 = vector.extract_strided_slice %23 {offsets = [0, 3], sizes = [8, 1], strides = [1, 1]} : vector<8x8xf32> to vector<8x1xf32>
    %45 = vector.extract_strided_slice %4 {offsets = [3, 0], sizes = [1, 16], strides = [1, 1]} : vector<8x16xf32> to vector<1x16xf32>
    %46 = vector.broadcast %44 : vector<8x1xf32> to vector<8x16xf32>
    %47 = vector.broadcast %45 : vector<1x16xf32> to vector<8x16xf32>
    %48 = arith.mulf %46, %47 : vector<8x16xf32>
    %49 = arith.addf %43, %48 : vector<8x16xf32>
    %50 = vector.extract_strided_slice %23 {offsets = [0, 4], sizes = [8, 1], strides = [1, 1]} : vector<8x8xf32> to vector<8x1xf32>
    %51 = vector.extract_strided_slice %4 {offsets = [4, 0], sizes = [1, 16], strides = [1, 1]} : vector<8x16xf32> to vector<1x16xf32>
    %52 = vector.broadcast %50 : vector<8x1xf32> to vector<8x16xf32>
    %53 = vector.broadcast %51 : vector<1x16xf32> to vector<8x16xf32>
    %54 = arith.mulf %52, %53 : vector<8x16xf32>
    %55 = arith.addf %49, %54 : vector<8x16xf32>
    %56 = vector.extract_strided_slice %23 {offsets = [0, 5], sizes = [8, 1], strides = [1, 1]} : vector<8x8xf32> to vector<8x1xf32>
    %57 = vector.extract_strided_slice %4 {offsets = [5, 0], sizes = [1, 16], strides = [1, 1]} : vector<8x16xf32> to vector<1x16xf32>
    %58 = vector.broadcast %56 : vector<8x1xf32> to vector<8x16xf32>
    %59 = vector.broadcast %57 : vector<1x16xf32> to vector<8x16xf32>
    %60 = arith.mulf %58, %59 : vector<8x16xf32>
    %61 = arith.addf %55, %60 : vector<8x16xf32>
    %62 = vector.extract_strided_slice %23 {offsets = [0, 6], sizes = [8, 1], strides = [1, 1]} : vector<8x8xf32> to vector<8x1xf32>
    %63 = vector.extract_strided_slice %4 {offsets = [6, 0], sizes = [1, 16], strides = [1, 1]} : vector<8x16xf32> to vector<1x16xf32>
    %64 = vector.broadcast %62 : vector<8x1xf32> to vector<8x16xf32>
    %65 = vector.broadcast %63 : vector<1x16xf32> to vector<8x16xf32>
    %66 = arith.mulf %64, %65 : vector<8x16xf32>
    %67 = arith.addf %61, %66 : vector<8x16xf32>
    %68 = vector.extract_strided_slice %23 {offsets = [0, 7], sizes = [8, 1], strides = [1, 1]} : vector<8x8xf32> to vector<8x1xf32>
    %69 = vector.extract_strided_slice %4 {offsets = [7, 0], sizes = [1, 16], strides = [1, 1]} : vector<8x16xf32> to vector<1x16xf32>
    %70 = vector.broadcast %68 : vector<8x1xf32> to vector<8x16xf32>
    %71 = vector.broadcast %69 : vector<1x16xf32> to vector<8x16xf32>
    %72 = arith.mulf %70, %71 : vector<8x16xf32>
    %73 = arith.addf %67, %72 : vector<8x16xf32>
    %cst_3 = arith.constant 0.000000e+00 : f32
    %74 = vector.broadcast %cst_3 : f32 to vector<8x16xf32>
    %75 = arith.maximumf %73, %74 : vector<8x16xf32>
    %76 = vector.shape_cast %7 : vector<1x1xf32> to vector<1x1xf32>
    %77 = vector.broadcast %76 : vector<1x1xf32> to vector<8x1xf32>
    %78 = vector.extract_strided_slice %75 {offsets = [0, 0], sizes = [8, 1], strides = [1, 1]} : vector<8x16xf32> to vector<8x1xf32>
    %79 = vector.extract_strided_slice %6 {offsets = [0, 0], sizes = [1, 1], strides = [1, 1]} : vector<16x1xf32> to vector<1x1xf32>
    %80 = vector.broadcast %79 : vector<1x1xf32> to vector<8x1xf32>
    %81 = arith.mulf %78, %80 : vector<8x1xf32>
    %82 = arith.addf %77, %81 : vector<8x1xf32>
    %83 = vector.extract_strided_slice %75 {offsets = [0, 1], sizes = [8, 1], strides = [1, 1]} : vector<8x16xf32> to vector<8x1xf32>
    %84 = vector.extract_strided_slice %6 {offsets = [1, 0], sizes = [1, 1], strides = [1, 1]} : vector<16x1xf32> to vector<1x1xf32>
    %85 = vector.broadcast %84 : vector<1x1xf32> to vector<8x1xf32>
    %86 = arith.mulf %83, %85 : vector<8x1xf32>
    %87 = arith.addf %82, %86 : vector<8x1xf32>
    %88 = vector.extract_strided_slice %75 {offsets = [0, 2], sizes = [8, 1], strides = [1, 1]} : vector<8x16xf32> to vector<8x1xf32>
    %89 = vector.extract_strided_slice %6 {offsets = [2, 0], sizes = [1, 1], strides = [1, 1]} : vector<16x1xf32> to vector<1x1xf32>
    %90 = vector.broadcast %89 : vector<1x1xf32> to vector<8x1xf32>
    %91 = arith.mulf %88, %90 : vector<8x1xf32>
    %92 = arith.addf %87, %91 : vector<8x1xf32>
    %93 = vector.extract_strided_slice %75 {offsets = [0, 3], sizes = [8, 1], strides = [1, 1]} : vector<8x16xf32> to vector<8x1xf32>
    %94 = vector.extract_strided_slice %6 {offsets = [3, 0], sizes = [1, 1], strides = [1, 1]} : vector<16x1xf32> to vector<1x1xf32>
    %95 = vector.broadcast %94 : vector<1x1xf32> to vector<8x1xf32>
    %96 = arith.mulf %93, %95 : vector<8x1xf32>
    %97 = arith.addf %92, %96 : vector<8x1xf32>
    %98 = vector.extract_strided_slice %75 {offsets = [0, 4], sizes = [8, 1], strides = [1, 1]} : vector<8x16xf32> to vector<8x1xf32>
    %99 = vector.extract_strided_slice %6 {offsets = [4, 0], sizes = [1, 1], strides = [1, 1]} : vector<16x1xf32> to vector<1x1xf32>
    %100 = vector.broadcast %99 : vector<1x1xf32> to vector<8x1xf32>
    %101 = arith.mulf %98, %100 : vector<8x1xf32>
    %102 = arith.addf %97, %101 : vector<8x1xf32>
    %103 = vector.extract_strided_slice %75 {offsets = [0, 5], sizes = [8, 1], strides = [1, 1]} : vector<8x16xf32> to vector<8x1xf32>
    %104 = vector.extract_strided_slice %6 {offsets = [5, 0], sizes = [1, 1], strides = [1, 1]} : vector<16x1xf32> to vector<1x1xf32>
    %105 = vector.broadcast %104 : vector<1x1xf32> to vector<8x1xf32>
    %106 = arith.mulf %103, %105 : vector<8x1xf32>
    %107 = arith.addf %102, %106 : vector<8x1xf32>
    %108 = vector.extract_strided_slice %75 {offsets = [0, 6], sizes = [8, 1], strides = [1, 1]} : vector<8x16xf32> to vector<8x1xf32>
    %109 = vector.extract_strided_slice %6 {offsets = [6, 0], sizes = [1, 1], strides = [1, 1]} : vector<16x1xf32> to vector<1x1xf32>
    %110 = vector.broadcast %109 : vector<1x1xf32> to vector<8x1xf32>
    %111 = arith.mulf %108, %110 : vector<8x1xf32>
    %112 = arith.addf %107, %111 : vector<8x1xf32>
    %113 = vector.extract_strided_slice %75 {offsets = [0, 7], sizes = [8, 1], strides = [1, 1]} : vector<8x16xf32> to vector<8x1xf32>
    %114 = vector.extract_strided_slice %6 {offsets = [7, 0], sizes = [1, 1], strides = [1, 1]} : vector<16x1xf32> to vector<1x1xf32>
    %115 = vector.broadcast %114 : vector<1x1xf32> to vector<8x1xf32>
    %116 = arith.mulf %113, %115 : vector<8x1xf32>
    %117 = arith.addf %112, %116 : vector<8x1xf32>
    %118 = vector.extract_strided_slice %75 {offsets = [0, 8], sizes = [8, 1], strides = [1, 1]} : vector<8x16xf32> to vector<8x1xf32>
    %119 = vector.extract_strided_slice %6 {offsets = [8, 0], sizes = [1, 1], strides = [1, 1]} : vector<16x1xf32> to vector<1x1xf32>
    %120 = vector.broadcast %119 : vector<1x1xf32> to vector<8x1xf32>
    %121 = arith.mulf %118, %120 : vector<8x1xf32>
    %122 = arith.addf %117, %121 : vector<8x1xf32>
    %123 = vector.extract_strided_slice %75 {offsets = [0, 9], sizes = [8, 1], strides = [1, 1]} : vector<8x16xf32> to vector<8x1xf32>
    %124 = vector.extract_strided_slice %6 {offsets = [9, 0], sizes = [1, 1], strides = [1, 1]} : vector<16x1xf32> to vector<1x1xf32>
    %125 = vector.broadcast %124 : vector<1x1xf32> to vector<8x1xf32>
    %126 = arith.mulf %123, %125 : vector<8x1xf32>
    %127 = arith.addf %122, %126 : vector<8x1xf32>
    %128 = vector.extract_strided_slice %75 {offsets = [0, 10], sizes = [8, 1], strides = [1, 1]} : vector<8x16xf32> to vector<8x1xf32>
    %129 = vector.extract_strided_slice %6 {offsets = [10, 0], sizes = [1, 1], strides = [1, 1]} : vector<16x1xf32> to vector<1x1xf32>
    %130 = vector.broadcast %129 : vector<1x1xf32> to vector<8x1xf32>
    %131 = arith.mulf %128, %130 : vector<8x1xf32>
    %132 = arith.addf %127, %131 : vector<8x1xf32>
    %133 = vector.extract_strided_slice %75 {offsets = [0, 11], sizes = [8, 1], strides = [1, 1]} : vector<8x16xf32> to vector<8x1xf32>
    %134 = vector.extract_strided_slice %6 {offsets = [11, 0], sizes = [1, 1], strides = [1, 1]} : vector<16x1xf32> to vector<1x1xf32>
    %135 = vector.broadcast %134 : vector<1x1xf32> to vector<8x1xf32>
    %136 = arith.mulf %133, %135 : vector<8x1xf32>
    %137 = arith.addf %132, %136 : vector<8x1xf32>
    %138 = vector.extract_strided_slice %75 {offsets = [0, 12], sizes = [8, 1], strides = [1, 1]} : vector<8x16xf32> to vector<8x1xf32>
    %139 = vector.extract_strided_slice %6 {offsets = [12, 0], sizes = [1, 1], strides = [1, 1]} : vector<16x1xf32> to vector<1x1xf32>
    %140 = vector.broadcast %139 : vector<1x1xf32> to vector<8x1xf32>
    %141 = arith.mulf %138, %140 : vector<8x1xf32>
    %142 = arith.addf %137, %141 : vector<8x1xf32>
    %143 = vector.extract_strided_slice %75 {offsets = [0, 13], sizes = [8, 1], strides = [1, 1]} : vector<8x16xf32> to vector<8x1xf32>
    %144 = vector.extract_strided_slice %6 {offsets = [13, 0], sizes = [1, 1], strides = [1, 1]} : vector<16x1xf32> to vector<1x1xf32>
    %145 = vector.broadcast %144 : vector<1x1xf32> to vector<8x1xf32>
    %146 = arith.mulf %143, %145 : vector<8x1xf32>
    %147 = arith.addf %142, %146 : vector<8x1xf32>
    %148 = vector.extract_strided_slice %75 {offsets = [0, 14], sizes = [8, 1], strides = [1, 1]} : vector<8x16xf32> to vector<8x1xf32>
    %149 = vector.extract_strided_slice %6 {offsets = [14, 0], sizes = [1, 1], strides = [1, 1]} : vector<16x1xf32> to vector<1x1xf32>
    %150 = vector.broadcast %149 : vector<1x1xf32> to vector<8x1xf32>
    %151 = arith.mulf %148, %150 : vector<8x1xf32>
    %152 = arith.addf %147, %151 : vector<8x1xf32>
    %153 = vector.extract_strided_slice %75 {offsets = [0, 15], sizes = [8, 1], strides = [1, 1]} : vector<8x16xf32> to vector<8x1xf32>
    %154 = vector.extract_strided_slice %6 {offsets = [15, 0], sizes = [1, 1], strides = [1, 1]} : vector<16x1xf32> to vector<1x1xf32>
    %155 = vector.broadcast %154 : vector<1x1xf32> to vector<8x1xf32>
    %156 = arith.mulf %153, %155 : vector<8x1xf32>
    %157 = arith.addf %152, %156 : vector<8x1xf32>
    %158 = arith.negf %157 : vector<8x1xf32>
    %159 = math.exp %158 : vector<8x1xf32>
    %cst_4 = arith.constant 1.000000e+00 : f32
    %160 = vector.broadcast %cst_4 : f32 to vector<8x1xf32>
    %161 = arith.addf %160, %159 : vector<8x1xf32>
    %162 = arith.divf %160, %161 : vector<8x1xf32>
    %c0_5 = arith.constant 0 : index
    %c0_6 = arith.constant 0 : index
    %163 = vector.load %arg3[%c0_5, %c0_6] : memref<8x1xf32, #tpu.memory_space<vmem>>, vector<8x1xf32>
    tpu.vector_store %arg3[%c0_5, %c0_6], %162 {strides = array<i32>} : memref<8x1xf32, #tpu.memory_space<vmem>>, vector<8x1xf32>,
    return
  }
  func.func @transform_0(%arg0: i32) -> (i32, i32) {
    %c0_i32 = arith.constant 0 : i32
    %c0_i32_0 = arith.constant 0 : i32
    return %arg0, %c0_i32 : i32, i32
  }
  func.func @transform_1(%arg0: i32) -> (i32, i32) {
    %c0_i32 = arith.constant 0 : i32
    %c0_i32_0 = arith.constant 0 : i32
    %c0_i32_1 = arith.constant 0 : i32
    return %c0_i32, %c0_i32_0 : i32, i32
  }
  func.func @transform_2(%arg0: i32) -> (i32, i32) {
    %c0_i32 = arith.constant 0 : i32
    %c0_i32_0 = arith.constant 0 : i32
    return %arg0, %c0_i32 : i32, i32
  }
}

</mosaic_0001>

<bundles_post_ra>
// kernel: tpu_custom_call.1
= control target key start
LH: loop header
LB: loop body
LE: loop exit
PB: predicated region body
PF: predicated region fallthrough
CT: control target
= control target key end

     0   :  { %v340_v0 = vmov 0   ;;  %v341_v2 = vmov 1   ;;  %s343_s15 = smov 1   ;;  %s344_s16 = smov 4   ;;  %v345_v8 = vmov 2   ;;  %v346_v9 = vmov 6   ;;  %s448_s0 = inlined_call_operand.vmem [shape: f32[8,2], index: 0, kind: input, shape index: {}]   ;;  %s449_s1 = inlined_call_operand.vmem [shape: f32[29,16], index: 1, kind: input, shape index: {}]   ;;  %s450_s2 = inlined_call_operand.vmem [shape: f32[8,1], index: 2, kind: output, shape index: {}]  }
   0x1   :  { %325 = vset.pattern.permute.xlu0 %v340_v0  ;;  %v11_v1 = vld [vmem:[%s448_s0] sm:$0xff]  ;;  %327 = vset.pattern.permute.xlu1 %v340_v0  ;;  %v399_v3 = vld [vmem:[%s449_s1 + $0x8] sm:$0xff]  ;;  %v404_v4 = vld [vmem:[%s449_s1 + $0x10] sm:$0xff]  ;;  %s342_s0 = smov 2   ;;  %v347_v22 = vmov 3   ;;  %s348_s19 = smov 7  }
   0x2   :  { %19 = vperm.xlu0 %325, %v11_v1   ;;  %v107_v5 = vperm.slane %v399_v3, 6  ;;  %v96_v6 = vperm.slane %v399_v3, 5  ;;  %v129_v7 = vperm.slane %v404_v4, 0  ;;  %329 = vset.pattern.permute.xlu2 %v345_v8  ;;  %v412_v10 = vld [vmem:[%s449_s1] sm:$0xff]  ;;  %v162_v21 = vperm.slane %v404_v4, 3  ;;  %s350_s20 = smov 10  }
   0x3   :  { %v22_v12 = vperm.slane %v412_v10, 0  ;;  %v16_v13 = vperm.slane %v412_v10, 2  ;;  %v29_v15 = vperm.slane %v412_v10, 1  ;;  %v349_v23 = vmov 7   ;;  %v422_v26 = vld [vmem:[%s449_s1 + $0x18] sm:$0x1f] }
   0x4   :  { %109 = vrot.lane.b32.xlu1 %v107_v5, %s342_s0  ;;  %98 = vrot.lane.b32.xlu2 %v96_v6, %s343_s15  ;;  %v195_v24 = vperm.slane %v404_v4, 6  ;;  %v351_v25 = vmov 5   ;;  %v352_v27 = vmov 4   ;;  %v228_v28 = vperm.slane %v422_v26, 1  ;;  %s353_s23 = smov 13   ;;  %s354_s24 = smov 3  }
   0x5   :  { %v118_v29 = vperm.slane %v399_v3, 7  ;;  %v151_v30 = vperm.slane %v404_v4, 2  ;;  %v140_v31 = vperm.slane %v404_v4, 1  ;;  %s355_s1 = smov 6   ;;  %s356_s25 = smov 5   ;;  %v184_v32 = vperm.slane %v404_v4, 5 }
   0x6   :  { %v173_v33 = vperm.slane %v404_v4, 4  ;;  %s357_s26 = smov 9   ;;  %s358_s27 = smov 8   ;;  %v217_v34 = vperm.slane %v422_v26, 0  ;;  %v206_v35 = vperm.slane %v404_v4, 7  ;;  %v250_v36 = vperm.slane %v422_v26, 3 }
   0x7   :  { %s359_s28 = smov 12   ;;  %s360_s29 = smov 11   ;;  %v239_v37 = vperm.slane %v422_v26, 2  ;;  %v39_v42 = vperm.slane %v412_v10, 3  ;;  %v33_v44 = vperm.slane %v399_v3, 3  ;;  %v46_v46 = vperm.slane %v412_v10, 4 }
   0x8   :  { %s361_s30 = smov 15   ;;  %s362_s3 = smov 14   ;;  %v53_v47 = vperm.slane %v412_v10, 5  ;;  %v60_v53 = vperm.slane %v412_v10, 6  ;;  %v67_v57 = vperm.slane %v412_v10, 7  ;;  %v74_v59 = vperm.slane %v399_v3, 0 }
   0x9   :  { %v88_v6 = vperm.slane %v399_v3, 2  ;;  %s363_s4 = smov 125   ;;  %s364_s5 = smov 126   ;;  %vm280_vm2 = vcmask 7168  }
   0xa   :  { %326 = vset.pattern.permute.xlu0 %v341_v2  ;;  %s365_s6 = smov 127   ;;  %s366_s7 = smov 122  }
   0xb   :  { %26 = vperm.xlu0 %326, %v11_v1   ;;  %v81_v1 = vperm.slane %v399_v3, 1  ;;  %s367_s8 = smov 123   ;;  %s368_s9 = smov 124  }
   0xc   :  { %s369_s10 = smov 119   ;;  %s370_s11 = smov 120  }
   0xd   :  { %s371_s12 = smov 121   ;;  %s372_s13 = smov 116  }
   0xe   :  { %s373_s14 = smov 117   ;;  %s374_s0 = smov 118  }
   0xf   :  { %s375_s15 = smov 113   ;;  %s377_s17 = smov 115  }
  0x13   :  { %131 = vrot.lane.b32.xlu0 %v129_v7, %s344_s16  ;;  %s376_s16 = smov 114  }
  0x14   :  { %333 = vset.pattern.permute.xlu0 %v346_v9 }
  0x5e   :  { %v99_v38 = vpop.permute.xlu2 %98 }
  0x74   :  { %v20_v11 = vpop.permute.xlu0 %19 }
  0x75   :  { %v23_v14 = vmul.f32 %v22_v12, %v20_v11 }
  0x76   :  { %v110_v39 = vpop.permute.xlu1 %109 }
  0x77   :  { %v24_v17 = vadd.f32 %v23_v14, %v16_v13 }
  0x7d   :  { %v27_v16 = vpop.permute.xlu0 %26 }
  0x7e   :  { %v30_v18 = vmul.f32 %v29_v15, %v27_v16 }
  0x80   :  { %v31_v19 = vadd.f32 %v30_v18, %v24_v17 }
  0x82   :  { %v32_v20 = vmax.f32 %v31_v19, 0.0 }
  0x84   :  { %78 = vperm.xlu0 %333, %v32_v20   ;;  %50 = vperm.xlu2 %329, %v32_v20  }
  0x85   :  { %36 = vperm.xlu1 %327, %v32_v20   ;;  %v132_v54 = vpop.permute.xlu0 %131 }
  0x8c   :  { %330 = vset.pattern.permute.xlu2 %v347_v22  ;;  %164 = vrot.lane.b32.xlu0 %v162_v21, %s348_s19 }
  0x8d   :  { %328 = vset.pattern.permute.xlu1 %v341_v2  ;;  %57 = vperm.xlu2 %330, %v32_v20  }
  0x8e   :  { %43 = vperm.xlu1 %328, %v32_v20   ;;  %335 = vset.pattern.permute.xlu0 %v349_v23 }
  0x94   :  { %197 = vrot.lane.b32.xlu0 %v195_v24, %s350_s20 }
  0x95   :  { %332 = vset.pattern.permute.xlu2 %v351_v25 }
  0x96   :  { %331 = vset.pattern.permute.xlu1 %v352_v27  ;;  %71 = vperm.xlu2 %332, %v32_v20  }
  0x97   :  { %64 = vperm.xlu1 %331, %v32_v20  }
  0x9c   :  { %230 = vrot.lane.b32.xlu0 %v228_v28, %s353_s23 }
  0x9e   :  { %120 = vrot.lane.b32.xlu2 %v118_v29, %s354_s24 }
  0x9f   :  { %334 = vset.pattern.permute.xlu1 %v349_v23 }
  0xa0   :  { %85 = vperm.xlu1 %334, %v32_v20  }
  0xa6   :  { %153 = vrot.lane.b32.xlu2 %v151_v30, %s355_s1 }
  0xa8   :  { %142 = vrot.lane.b32.xlu1 %v140_v31, %s356_s25 }
  0xae   :  { %186 = vrot.lane.b32.xlu2 %v184_v32, %s357_s26 }
  0xb0   :  { %175 = vrot.lane.b32.xlu1 %v173_v33, %s358_s27 }
  0xb6   :  { %219 = vrot.lane.b32.xlu2 %v217_v34, %s359_s28 }
  0xb8   :  { %208 = vrot.lane.b32.xlu1 %v206_v35, %s360_s29 }
  0xbe   :  { %252 = vrot.lane.b32.xlu2 %v250_v36, %s361_s30 }
  0xc0   :  { %241 = vrot.lane.b32.xlu1 %v239_v37, %s362_s3 }
  0xde   :  { %v51_v40 = vpop.permute.xlu2 %50 }
  0xdf   :  { %v54_v52 = vmul.f32 %v53_v47, %v51_v40  ;;  %v93_v40 = vperm.slane %v399_v3, 4 }
  0xe7   :  { %v58_v43 = vpop.permute.xlu2 %57 }
  0xe8   :  { %v61_v58 = vmul.f32 %v60_v53, %v58_v43 }
  0xf0   :  { %v72_v55 = vpop.permute.xlu2 %71 }
  0xf1   :  { %v75_v0 = vmul.f32 %v74_v59, %v72_v55 }
  0xf6   :  { %v79_v2 = vpop.permute.xlu0 %78 }
  0xf7   :  { %v37_v41 = vpop.permute.xlu1 %36  ;;  %v82_v7 = vmul.f32 %v81_v1, %v79_v2 }
  0xf8   :  { %v40_v45 = vmul.f32 %v39_v42, %v37_v41  ;;  %v121_v4 = vpop.permute.xlu2 %120  ;;  %v92_v41 = vperm.slane %v422_v26, 4 }
  0xfa   :  { %v41_v49 = vadd.f32 %v40_v45, %v33_v44 }
  0xfe   :  { %v165_v23 = vpop.permute.xlu0 %164 }
 0x100   :  { %v44_v48 = vpop.permute.xlu1 %43  ;;  %v154_v13 = vpop.permute.xlu2 %153 }
 0x101   :  { %v47_v50 = vmul.f32 %v46_v46, %v44_v48 }
 0x103   :  { %v48_v51 = vadd.f32 %v47_v50, %v41_v49 }
 0x105   :  { %v55_v56 = vadd.f32 %v54_v52, %v48_v51 }
 0x106   :  { %v198_v30 = vpop.permute.xlu0 %197 }
 0x107   :  { %v62_v61 = vadd.f32 %v61_v58, %v55_v56 }
 0x108   :  { %v187_v20 = vpop.permute.xlu2 %186 }
 0x109   :  { %v65_v60 = vpop.permute.xlu1 %64 }
 0x10a   :  { %v68_v62 = vmul.f32 %v67_v57, %v65_v60 }
 0x10c   :  { %v69_v63 = vadd.f32 %v68_v62, %v62_v61 }
 0x10e   :  { %v76_v5 = vadd.f32 %v75_v0, %v69_v63  ;;  %v231_v36 = vpop.permute.xlu0 %230 }
 0x110   :  { %v83_v9 = vadd.f32 %v82_v7, %v76_v5  ;;  %v220_v28 = vpop.permute.xlu2 %219 }
 0x112   :  { %v86_v8 = vpop.permute.xlu1 %85 }
 0x113   :  { %v89_v11 = vmul.f32 %v88_v6, %v86_v8 }
 0x115   :  { %v90_v10 = vadd.f32 %v89_v11, %v83_v9 }
 0x117   :  { %v91_v12 = vmax.f32 %v90_v10, 0.0 }
 0x118   :  { %v253_v34 = vpop.permute.xlu2 %252 }
 0x119   :  { %v123_v14 = vmul.f32 %v121_v4, %v91_v12  ;;  %v112_v15 = vmul.f32 %v110_v39, %v91_v12  ;;  %v101_v17 = vmul.f32 %v99_v38, %v91_v12  ;;  %v156_v19 = vmul.f32 %v154_v13, %v91_v12 }
 0x11a   :  { %v143_v16 = vpop.permute.xlu1 %142  ;;  %v134_v22 = vmul.f32 %v132_v54, %v91_v12  ;;  %v189_v25 = vmul.f32 %v187_v20, %v91_v12  ;;  %v167_v27 = vmul.f32 %v165_v23, %v91_v12  ;;  %v222_v32 = vmul.f32 %v220_v28, %v91_v12 }
 0x11b   :  { %125 = vrot.lane.b32.xlu2 %v123_v14, %s363_s4  ;;  %114 = vrot.lane.b32.xlu1 %v112_v15, %s364_s5  ;;  %v145_v18 = vmul.f32 %v143_v16, %v91_v12  ;;  %v200_v33 = vmul.f32 %v198_v30, %v91_v12  ;;  %v255_v37 = vmul.f32 %v253_v34, %v91_v12 }
 0x11c   :  { %103 = vrot.lane.b32.xlu0 %v101_v17, %s365_s6  ;;  %v233_v39 = vmul.f32 %v231_v36, %v91_v12  ;;  %v94_v42 = vmul.f32 %v93_v40, %v91_v12 }
 0x11e   :  { %v95_v45 = vadd.f32 %v94_v42, %v92_v41 }
 0x122   :  { %v176_v21 = vpop.permute.xlu1 %175 }
 0x123   :  { %158 = vrot.lane.b32.xlu2 %v156_v19, %s366_s7  ;;  %147 = vrot.lane.b32.xlu1 %v145_v18, %s367_s8  ;;  %v178_v24 = vmul.f32 %v176_v21, %v91_v12 }
 0x124   :  { %136 = vrot.lane.b32.xlu0 %v134_v22, %s368_s9 }
 0x12a   :  { %v209_v29 = vpop.permute.xlu1 %208 }
 0x12b   :  { %191 = vrot.lane.b32.xlu2 %v189_v25, %s369_s10  ;;  %180 = vrot.lane.b32.xlu1 %v178_v24, %s370_s11  ;;  %v211_v31 = vmul.f32 %v209_v29, %v91_v12 }
 0x12c   :  { %169 = vrot.lane.b32.xlu0 %v167_v27, %s371_s12 }
 0x132   :  { %v242_v35 = vpop.permute.xlu1 %241 }
 0x133   :  { %224 = vrot.lane.b32.xlu2 %v222_v32, %s372_s13  ;;  %213 = vrot.lane.b32.xlu1 %v211_v31, %s373_s14  ;;  %v244_v38 = vmul.f32 %v242_v35, %v91_v12 }
 0x134   :  { %202 = vrot.lane.b32.xlu0 %v200_v33, %s374_s0 }
 0x13b   :  { %257 = vrot.lane.b32.xlu2 %v255_v37, %s375_s15  ;;  %246 = vrot.lane.b32.xlu1 %v244_v38, %s376_s16 }
 0x13c   :  { %235 = vrot.lane.b32.xlu0 %v233_v39, %s377_s17 }
 0x175   :  { %v126_v43 = vpop.permute.xlu2 %125 }
 0x17d   :  { %v159_v49 = vpop.permute.xlu2 %158 }
 0x185   :  { %v192_v57 = vpop.permute.xlu2 %191 }
 0x18d   :  { %v115_v44 = vpop.permute.xlu1 %114  ;;  %v225_v63 = vpop.permute.xlu2 %224 }
 0x18e   :  { %v104_v46 = vpop.permute.xlu0 %103 }
 0x18f   :  { %v106_v47 = vadd.f32 %v104_v46, %v95_v45 }
 0x191   :  { %v117_v48 = vadd.f32 %v115_v44, %v106_v47 }
 0x193   :  { %v128_v51 = vadd.f32 %v126_v43, %v117_v48 }
 0x195   :  { %v148_v50 = vpop.permute.xlu1 %147  ;;  %v258_v7 = vpop.permute.xlu2 %257 }
 0x196   :  { %v137_v52 = vpop.permute.xlu0 %136 }
 0x197   :  { %v139_v53 = vadd.f32 %v137_v52, %v128_v51 }
 0x199   :  { %v150_v54 = vadd.f32 %v148_v50, %v139_v53 }
 0x19b   :  { %v161_v56 = vadd.f32 %v159_v49, %v150_v54 }
 0x19d   :  { %v181_v55 = vpop.permute.xlu1 %180 }
 0x19e   :  { %v170_v58 = vpop.permute.xlu0 %169 }
 0x19f   :  { %v172_v3 = vadd.f32 %v170_v58, %v161_v56 }
 0x1a1   :  { %v183_v59 = vadd.f32 %v181_v55, %v172_v3 }
 0x1a3   :  { %v194_v26 = vadd.f32 %v192_v57, %v183_v59 }
 0x1a5   :  { %v214_v60 = vpop.permute.xlu1 %213 }
 0x1a6   :  { %v203_v61 = vpop.permute.xlu0 %202 }
 0x1a7   :  { %v205_v62 = vadd.f32 %v203_v61, %v194_v26 }
 0x1a9   :  { %v216_v0 = vadd.f32 %v214_v60, %v205_v62 }
 0x1ab   :  { %v227_v1 = vadd.f32 %v225_v63, %v216_v0 }
 0x1ad   :  { %v247_v5 = vpop.permute.xlu1 %246 }
 0x1ae   :  { %v236_v2 = vpop.permute.xlu0 %235 }
 0x1af   :  { %v238_v4 = vadd.f32 %v236_v2, %v227_v1 }
 0x1b1   :  { %v249_v6 = vadd.f32 %v247_v5, %v238_v4 }
 0x1b3   :  { %v260_v8 = vadd.f32 %v258_v7, %v249_v6 }
 0x1b5   :  { %v286_v9 = vmul.f32 -1.442695, %v260_v8 }
 0x1b7   :  { %336 = vpow2.f32 %v286_v9 }
 0x1bd   :  { %v337_v11 = vpop.eup %336 }
 0x1be   :  { %v264_v10 = vadd.f32 1.0, %v337_v11 }
 0x1c0   :  { %338 = vrcp.f32 %v264_v10  ;;  %v276_v15 = vand.u32 2147483648, %v264_v10  ;;  %v274_v17 = vand.u32 2147483647, %v264_v10  ;;  %vm270_vm1 = vweird.f32 %v264_v10 }
 0x1c2   :  { %v277_v19 = vor.u32 1.1754944e-38, %v276_v15  ;;  %vm275_vm4 = vcmp.eq.f32.partialorder %v274_v17, 8.507059e+37 }
 0x1c6   :  { %v339_v12 = vpop.eup %338 }
 0x1c7   :  { %v266_v13 = vmul.f32 %v339_v12, %v264_v10  ;;  %vm271_vm0 = vweird.f32 %v339_v12 }
 0x1c8   :  { %vm272_vm3 = vmor %vm270_vm1, %vm271_vm0 }
 0x1c9   :  { %v267_v14 = vsub.f32 1.0, %v266_v13 }
 0x1cb   :  { %v268_v16 = vmul.f32 %v339_v12, %v267_v14 }
 0x1cd   :  { %v269_v18 = vadd.f32 %v339_v12, %v268_v16 }
 0x1cf   :  { %v273_v20 = vsel %vm272_vm3, %v339_v12, %v269_v18 }
 0x1d0   :  { %v278_v21 = vsel %vm275_vm4, %v277_v19, %v273_v20 }
 0x1d1   :  { %281 = vst.msk [vmem:[%s450_s2] sm:$0xff] %vm280_vm2, %v278_v21 }

</bundles_post_ra>
